<compile_context>
chip_gen: v7x
topology: tpu7x:2x2x1
jax: 0.10.0
libtpu: 0.0.40
codegen_flags: <defaults>
</compile_context>

<pallas_src>
import functools

import jax
import jax.numpy as jnp
from jax.experimental import pallas as pl
from jax.experimental.pallas import tpu as pltpu


def _rmse_kernel(params_ref, y_ref, j_ref, k1_ref, k2_ref, sub_ref,
                 out_ref, acc_ref, *, n_total):
    """params_ref: SMEM (5, S) pre-transformed [A', U', Lam, Lam*G1, Lam*G2].
    y/j/k1/k2: VMEM (TR, 128) f32.  sub: VMEM (TR, 128) i32.
    out: SMEM (1, 1) f32 (written on the last grid step).
    acc: SMEM (1,) f32 running sum of squared errors."""
    i = pl.program_id(0)

    @pl.when(i == 0)
    def _():
        acc_ref[0] = 0.0

    S = params_ref.shape[1]
    sub = sub_ref[...]
    y = y_ref[...]

    # Gather the (already transformed) per-subject constants via an unrolled
    # select over the small subject axis; init from subject 0, loop s=1..S-1.
    A = jnp.full(y.shape, params_ref[0, 0], jnp.float32)
    U = jnp.full(y.shape, params_ref[1, 0], jnp.float32)
    Lam = jnp.full(y.shape, params_ref[2, 0], jnp.float32)
    LG1 = jnp.full(y.shape, params_ref[3, 0], jnp.float32)
    LG2 = jnp.full(y.shape, params_ref[4, 0], jnp.float32)
    for s in range(1, S):
        m = sub == s
        A = jnp.where(m, params_ref[0, s], A)
        U = jnp.where(m, params_ref[1, s], U)
        Lam = jnp.where(m, params_ref[2, s], Lam)
        LG1 = jnp.where(m, params_ref[3, s], LG1)
        LG2 = jnp.where(m, params_ref[4, s], LG2)

    # mu = A' - U' * exp(-(Lam*j + (Lam*G1)*k1 + (Lam*G2)*k2))   (Lam pre-folded)
    mu = A - U * jnp.exp(-(Lam * j_ref[...] + LG1 * k1_ref[...] + LG2 * k2_ref[...]))
    err = y - mu
    acc_ref[0] = acc_ref[0] + jnp.sum(err * err)

    @pl.when(i == pl.num_programs(0) - 1)
    def _():
        out_ref[0, 0] = jnp.sqrt(acc_ref[0] / n_total)


def first_model_loss(params, y, j, k1, k2, sub, *, block_rows=None):
    """params: (5, S) f32 raw [A, U, Lambda, Gamma1, Gamma2].
    y/j/k1/k2: (N,) f32, sub: (N,) i32.  Returns scalar RMSE loss."""
    N = y.shape[0]
    C = 128
    assert N % (8 * C) == 0, "N must be a multiple of 1024 for the (8,128)-tiled layout"
    R = N // C

    if block_rows is None:
        block_rows = 8
        # Largest power-of-two row-tile <= 2048 that divides R (VMEM-safe on v7x:
        # 5 inputs x 2 buffers x (2048,128) f32 = 10 MiB << 32 MiB scoped default).
        for cand in (2048, 1024, 512, 256, 128, 64, 32, 16, 8):
            if R % cand == 0:
                block_rows = cand
                break
    assert R % block_rows == 0, "block_rows must divide N // 128"
    grid = (R // block_rows,)

    # Apply the relu/sigmoid transforms ONCE to the tiny (5, S) table (they
    # commute with the subject gather), and fold Lam into Lam*G1 / Lam*G2 so
    # only the exp remains on the per-element path.
    A_raw, U_raw, Lam_raw, G1_raw, G2_raw = params.astype(jnp.float32)
    Lam = jax.nn.sigmoid(Lam_raw) * 0.2
    table = jnp.stack([
        jnp.maximum(A_raw, 0.0),
        jnp.maximum(U_raw, 0.0),
        Lam,
        Lam * jax.nn.sigmoid(G1_raw),
        Lam * jax.nn.sigmoid(G2_raw),
    ])

    def rs_f(x):
        return x.astype(jnp.float32).reshape(R, C)

    vblk = pl.BlockSpec((block_rows, C), lambda i: (i, 0))

    out = pl.pallas_call(
        functools.partial(_rmse_kernel, n_total=float(N)),
        out_shape=jax.ShapeDtypeStruct((1, 1), jnp.float32),
        grid_spec=pltpu.PrefetchScalarGridSpec(
            num_scalar_prefetch=0,
            grid=grid,
            in_specs=[
                pl.BlockSpec(memory_space=pltpu.MemorySpace.SMEM),  # param table
                vblk,                                               # y
                vblk,                                               # j
                vblk,                                               # k1
                vblk,                                               # k2
                pl.BlockSpec((block_rows, C), lambda i: (i, 0)),    # sub (i32)
            ],
            out_specs=pl.BlockSpec(memory_space=pltpu.MemorySpace.SMEM),
            scratch_shapes=[pltpu.SMEM((1,), jnp.float32)],
        ),
        compiler_params=pltpu.CompilerParams(
            dimension_semantics=("arbitrary",),   # running-sum accumulation axis
        ),
        cost_estimate=pl.CostEstimate(
            flops=40 * N, transcendentals=N, bytes_accessed=20 * N),
    )(table, rs_f(y), rs_f(j), rs_f(k1), rs_f(k2),
      sub.astype(jnp.int32).reshape(R, C))
    return out[0, 0]


def _reference_loss(params, y, j, k1, k2, sub):
    A, U, Lam, G1, G2 = params
    A = jax.nn.relu(A)[sub]
    U = jax.nn.relu(U)[sub]
    Lam = (jax.nn.sigmoid(Lam) * 0.2)[sub]
    G1 = jax.nn.sigmoid(G1)[sub]
    G2 = jax.nn.sigmoid(G2)[sub]
    mu = A - U * jnp.exp(-Lam * (j + G1 * k1 + G2 * k2))
    return jnp.sqrt(jnp.mean((y - mu) ** 2))


if __name__ == "__main__":
    key = jax.random.PRNGKey(0)
    subjectcount = 4
    N = 8192  # number of observations (multiple of 1024 for the (8,128) layout)

    k_y, k_j, k_k1, k_k2, k_sub, k_p = jax.random.split(key, 6)
    y = jax.random.normal(k_y, (N,), jnp.float32) * 0.5 + 2.0
    j = jax.random.uniform(k_j, (N,), jnp.float32, 0.0, 5.0)
    k1 = jax.random.uniform(k_k1, (N,), jnp.float32, 0.0, 2.0)
    k2 = jax.random.uniform(k_k2, (N,), jnp.float32, 0.0, 2.0)
    sub = jax.random.randint(k_sub, (N,), 0, subjectcount, jnp.int32)

    # Deterministic parameter init mirroring __init__: randn(S) (+ y.mean() for A, U).
    raw = jax.random.normal(k_p, (5, subjectcount), jnp.float32)
    y_mean = jnp.mean(y)
    params = raw.at[0].add(y_mean).at[1].add(y_mean)  # rows: A, U, Lambda, Gamma1, Gamma2

    # block_rows=16 -> (16,128) tiles, grid=(4,): exercises tiling + accumulation.
    loss = first_model_loss(params, y, j, k1, k2, sub, block_rows=16)
    loss = jax.block_until_ready(loss)

    ref = _reference_loss(params, y, j, k1, k2, sub)
    assert jnp.allclose(loss, ref, rtol=1e-5, atol=1e-5), (loss, ref)
    print("KERNEL_OK")
</pallas_src>

<mosaic_0001>
module attributes {stable_mosaic.version = 11 : i64} {
  func.func @_rmse_kernel(%arg0: i32, %arg1: memref<5x4xf32, #tpu.memory_space<smem>>, %arg2: memref<16x128xf32, #tpu.memory_space<vmem>>, %arg3: memref<16x128xf32, #tpu.memory_space<vmem>>, %arg4: memref<16x128xf32, #tpu.memory_space<vmem>>, %arg5: memref<16x128xf32, #tpu.memory_space<vmem>>, %arg6: memref<16x128xi32, #tpu.memory_space<vmem>>, %arg7: memref<1x1xf32, #tpu.memory_space<smem>>, %arg8: memref<1xf32, #tpu.memory_space<smem>>) attributes {dimension_semantics = [#tpu.dimension_semantics<arbitrary>], iteration_bounds = array<i64: 4>, scalar_prefetch = 0 : i64, scratch_operands = 1 : i64, tpu.core_type = #tpu.core_type<tc>, window_params = [{transform_indices = @transform_0, window_bounds = array<i64: 5, 4>}, {transform_indices = @transform_1, window_bounds = array<i64: 16, 128>}, {transform_indices = @transform_2, window_bounds = array<i64: 16, 128>}, {transform_indices = @transform_3, window_bounds = array<i64: 16, 128>}, {transform_indices = @transform_4, window_bounds = array<i64: 16, 128>}, {transform_indices = @transform_5, window_bounds = array<i64: 16, 128>}, {transform_indices = @transform_6, window_bounds = array<i64: 1, 1>}]} {
    %c0_i32 = arith.constant 0 : i32
    %0 = arith.cmpi eq, %arg0, %c0_i32 : i32
    %1 = arith.extui %0 : i1 to i32
    %c0_i32_0 = arith.constant 0 : i32
    %2 = arith.cmpi ne, %1, %c0_i32_0 : i32
    scf.if %2 {
      %cst_51 = arith.constant 0.000000e+00 : f32
      %c0_52 = arith.constant 0 : index
      %91 = memref.load %arg8[%c0_52] : memref<1xf32, #tpu.memory_space<smem>>
      memref.store %cst_51, %arg8[%c0_52] : memref<1xf32, #tpu.memory_space<smem>>
    } else {
    }
    %c0 = arith.constant 0 : index
    %c0_1 = arith.constant 0 : index
    %3 = vector.load %arg6[%c0, %c0_1] : memref<16x128xi32, #tpu.memory_space<vmem>>, vector<16x128xi32>
    %c0_2 = arith.constant 0 : index
    %c0_3 = arith.constant 0 : index
    %4 = vector.load %arg2[%c0_2, %c0_3] : memref<16x128xf32, #tpu.memory_space<vmem>>, vector<16x128xf32>
    %c0_4 = arith.constant 0 : index
    %c0_5 = arith.constant 0 : index
    %5 = memref.load %arg1[%c0_4, %c0_5] : memref<5x4xf32, #tpu.memory_space<smem>>
    %6 = vector.broadcast %5 : f32 to vector<16x128xf32>
    %c1 = arith.constant 1 : index
    %c0_6 = arith.constant 0 : index
    %7 = memref.load %arg1[%c1, %c0_6] : memref<5x4xf32, #tpu.memory_space<smem>>
    %8 = vector.broadcast %7 : f32 to vector<16x128xf32>
    %c2 = arith.constant 2 : index
    %c0_7 = arith.constant 0 : index
    %9 = memref.load %arg1[%c2, %c0_7] : memref<5x4xf32, #tpu.memory_space<smem>>
    %10 = vector.broadcast %9 : f32 to vector<16x128xf32>
    %c3 = arith.constant 3 : index
    %c0_8 = arith.constant 0 : index
    %11 = memref.load %arg1[%c3, %c0_8] : memref<5x4xf32, #tpu.memory_space<smem>>
    %12 = vector.broadcast %11 : f32 to vector<16x128xf32>
    %c4 = arith.constant 4 : index
    %c0_9 = arith.constant 0 : index
    %13 = memref.load %arg1[%c4, %c0_9] : memref<5x4xf32, #tpu.memory_space<smem>>
    %14 = vector.broadcast %13 : f32 to vector<16x128xf32>
    %c1_i32 = arith.constant 1 : i32
    %15 = vector.broadcast %c1_i32 : i32 to vector<16x128xi32>
    %16 = arith.cmpi eq, %3, %15 : vector<16x128xi32>
    %c0_10 = arith.constant 0 : index
    %c1_11 = arith.constant 1 : index
    %17 = memref.load %arg1[%c0_10, %c1_11] : memref<5x4xf32, #tpu.memory_space<smem>>
    %18 = vector.broadcast %17 : f32 to vector<16x128xf32>
    %19 = arith.select %16, %18, %6 : vector<16x128xi1>, vector<16x128xf32>
    %c1_12 = arith.constant 1 : index
    %c1_13 = arith.constant 1 : index
    %20 = memref.load %arg1[%c1_12, %c1_13] : memref<5x4xf32, #tpu.memory_space<smem>>
    %21 = vector.broadcast %20 : f32 to vector<16x128xf32>
    %22 = arith.select %16, %21, %8 : vector<16x128xi1>, vector<16x128xf32>
    %c2_14 = arith.constant 2 : index
    %c1_15 = arith.constant 1 : index
    %23 = memref.load %arg1[%c2_14, %c1_15] : memref<5x4xf32, #tpu.memory_space<smem>>
    %24 = vector.broadcast %23 : f32 to vector<16x128xf32>
    %25 = arith.select %16, %24, %10 : vector<16x128xi1>, vector<16x128xf32>
    %c3_16 = arith.constant 3 : index
    %c1_17 = arith.constant 1 : index
    %26 = memref.load %arg1[%c3_16, %c1_17] : memref<5x4xf32, #tpu.memory_space<smem>>
    %27 = vector.broadcast %26 : f32 to vector<16x128xf32>
    %28 = arith.select %16, %27, %12 : vector<16x128xi1>, vector<16x128xf32>
    %c4_18 = arith.constant 4 : index
    %c1_19 = arith.constant 1 : index
    %29 = memref.load %arg1[%c4_18, %c1_19] : memref<5x4xf32, #tpu.memory_space<smem>>
    %30 = vector.broadcast %29 : f32 to vector<16x128xf32>
    %31 = arith.select %16, %30, %14 : vector<16x128xi1>, vector<16x128xf32>
    %c2_i32 = arith.constant 2 : i32
    %32 = vector.broadcast %c2_i32 : i32 to vector<16x128xi32>
    %33 = arith.cmpi eq, %3, %32 : vector<16x128xi32>
    %c0_20 = arith.constant 0 : index
    %c2_21 = arith.constant 2 : index
    %34 = memref.load %arg1[%c0_20, %c2_21] : memref<5x4xf32, #tpu.memory_space<smem>>
    %35 = vector.broadcast %34 : f32 to vector<16x128xf32>
    %36 = arith.select %33, %35, %19 : vector<16x128xi1>, vector<16x128xf32>
    %c1_22 = arith.constant 1 : index
    %c2_23 = arith.constant 2 : index
    %37 = memref.load %arg1[%c1_22, %c2_23] : memref<5x4xf32, #tpu.memory_space<smem>>
    %38 = vector.broadcast %37 : f32 to vector<16x128xf32>
    %39 = arith.select %33, %38, %22 : vector<16x128xi1>, vector<16x128xf32>
    %c2_24 = arith.constant 2 : index
    %c2_25 = arith.constant 2 : index
    %40 = memref.load %arg1[%c2_24, %c2_25] : memref<5x4xf32, #tpu.memory_space<smem>>
    %41 = vector.broadcast %40 : f32 to vector<16x128xf32>
    %42 = arith.select %33, %41, %25 : vector<16x128xi1>, vector<16x128xf32>
    %c3_26 = arith.constant 3 : index
    %c2_27 = arith.constant 2 : index
    %43 = memref.load %arg1[%c3_26, %c2_27] : memref<5x4xf32, #tpu.memory_space<smem>>
    %44 = vector.broadcast %43 : f32 to vector<16x128xf32>
    %45 = arith.select %33, %44, %28 : vector<16x128xi1>, vector<16x128xf32>
    %c4_28 = arith.constant 4 : index
    %c2_29 = arith.constant 2 : index
    %46 = memref.load %arg1[%c4_28, %c2_29] : memref<5x4xf32, #tpu.memory_space<smem>>
    %47 = vector.broadcast %46 : f32 to vector<16x128xf32>
    %48 = arith.select %33, %47, %31 : vector<16x128xi1>, vector<16x128xf32>
    %c3_i32 = arith.constant 3 : i32
    %49 = vector.broadcast %c3_i32 : i32 to vector<16x128xi32>
    %50 = arith.cmpi eq, %3, %49 : vector<16x128xi32>
    %c0_30 = arith.constant 0 : index
    %c3_31 = arith.constant 3 : index
    %51 = memref.load %arg1[%c0_30, %c3_31] : memref<5x4xf32, #tpu.memory_space<smem>>
    %52 = vector.broadcast %51 : f32 to vector<16x128xf32>
    %53 = arith.select %50, %52, %36 : vector<16x128xi1>, vector<16x128xf32>
    %c1_32 = arith.constant 1 : index
    %c3_33 = arith.constant 3 : index
    %54 = memref.load %arg1[%c1_32, %c3_33] : memref<5x4xf32, #tpu.memory_space<smem>>
    %55 = vector.broadcast %54 : f32 to vector<16x128xf32>
    %56 = arith.select %50, %55, %39 : vector<16x128xi1>, vector<16x128xf32>
    %c2_34 = arith.constant 2 : index
    %c3_35 = arith.constant 3 : index
    %57 = memref.load %arg1[%c2_34, %c3_35] : memref<5x4xf32, #tpu.memory_space<smem>>
    %58 = vector.broadcast %57 : f32 to vector<16x128xf32>
    %59 = arith.select %50, %58, %42 : vector<16x128xi1>, vector<16x128xf32>
    %c3_36 = arith.constant 3 : index
    %c3_37 = arith.constant 3 : index
    %60 = memref.load %arg1[%c3_36, %c3_37] : memref<5x4xf32, #tpu.memory_space<smem>>
    %61 = vector.broadcast %60 : f32 to vector<16x128xf32>
    %62 = arith.select %50, %61, %45 : vector<16x128xi1>, vector<16x128xf32>
    %c4_38 = arith.constant 4 : index
    %c3_39 = arith.constant 3 : index
    %63 = memref.load %arg1[%c4_38, %c3_39] : memref<5x4xf32, #tpu.memory_space<smem>>
    %64 = vector.broadcast %63 : f32 to vector<16x128xf32>
    %65 = arith.select %50, %64, %48 : vector<16x128xi1>, vector<16x128xf32>
    %c0_40 = arith.constant 0 : index
    %c0_41 = arith.constant 0 : index
    %66 = vector.load %arg3[%c0_40, %c0_41] : memref<16x128xf32, #tpu.memory_space<vmem>>, vector<16x128xf32>
    %67 = arith.mulf %59, %66 : vector<16x128xf32>
    %c0_42 = arith.constant 0 : index
    %c0_43 = arith.constant 0 : index
    %68 = vector.load %arg4[%c0_42, %c0_43] : memref<16x128xf32, #tpu.memory_space<vmem>>, vector<16x128xf32>
    %69 = arith.mulf %62, %68 : vector<16x128xf32>
    %70 = arith.addf %67, %69 : vector<16x128xf32>
    %c0_44 = arith.constant 0 : index
    %c0_45 = arith.constant 0 : index
    %71 = vector.load %arg5[%c0_44, %c0_45] : memref<16x128xf32, #tpu.memory_space<vmem>>, vector<16x128xf32>
    %72 = arith.mulf %65, %71 : vector<16x128xf32>
    %73 = arith.addf %70, %72 : vector<16x128xf32>
    %cst = arith.constant 0.000000e+00 : f32
    %74 = vector.broadcast %cst : f32 to vector<16x128xf32>
    %75 = arith.subf %74, %73 : vector<16x128xf32>
    %76 = math.exp %75 : vector<16x128xf32>
    %77 = arith.mulf %56, %76 : vector<16x128xf32>
    %78 = arith.subf %53, %77 : vector<16x128xf32>
    %79 = arith.subf %4, %78 : vector<16x128xf32>
    %c0_46 = arith.constant 0 : index
    %80 = memref.load %arg8[%c0_46] : memref<1xf32, #tpu.memory_space<smem>>
    %81 = arith.mulf %79, %79 : vector<16x128xf32>
    %82 = vector.shape_cast %81 : vector<16x128xf32> to vector<1x16x128xf32>
    %cst_47 = arith.constant dense<0.000000e+00> : vector<1xf32>
    %83 = vector.multi_reduction <add>, %82, %cst_47 [1, 2] : vector<1x16x128xf32> to vector<1xf32>
    %84 = vector.shape_cast %83 : vector<1xf32> to vector<1x1x1xf32>
    %85 = vector.extract %84[0, 0, 0] : f32 from vector<1x1x1xf32>
    %86 = arith.addf %80, %85 : f32
    %c0_48 = arith.constant 0 : index
    %87 = memref.load %arg8[%c0_48] : memref<1xf32, #tpu.memory_space<smem>>
    memref.store %86, %arg8[%c0_48] : memref<1xf32, #tpu.memory_space<smem>>
    %c3_i32_49 = arith.constant 3 : i32
    %88 = arith.cmpi eq, %arg0, %c3_i32_49 : i32
    %89 = arith.extui %88 : i1 to i32
    %c0_i32_50 = arith.constant 0 : i32
    %90 = arith.cmpi ne, %89, %c0_i32_50 : i32
    scf.if %90 {
      %c0_51 = arith.constant 0 : index
      %91 = memref.load %arg8[%c0_51] : memref<1xf32, #tpu.memory_space<smem>>
      %cst_52 = arith.constant 8.192000e+03 : f32
      %92 = arith.divf %91, %cst_52 : f32
      %93 = math.sqrt %92 : f32
      %c0_53 = arith.constant 0 : index
      %c0_54 = arith.constant 0 : index
      %94 = memref.load %arg7[%c0_53, %c0_54] : memref<1x1xf32, #tpu.memory_space<smem>>
      memref.store %93, %arg7[%c0_53, %c0_54] : memref<1x1xf32, #tpu.memory_space<smem>>
    } else {
    }
    return
  }
  func.func @transform_0(%arg0: i32) -> (i32, i32) {
    %c0_i32 = arith.constant 0 : i32
    %c0_i32_0 = arith.constant 0 : i32
    %c0_i32_1 = arith.constant 0 : i32
    return %c0_i32, %c0_i32_0 : i32, i32
  }
  func.func @transform_1(%arg0: i32) -> (i32, i32) {
    %c0_i32 = arith.constant 0 : i32
    %c0_i32_0 = arith.constant 0 : i32
    return %arg0, %c0_i32 : i32, i32
  }
  func.func @transform_2(%arg0: i32) -> (i32, i32) {
    %c0_i32 = arith.constant 0 : i32
    %c0_i32_0 = arith.constant 0 : i32
    return %arg0, %c0_i32 : i32, i32
  }
  func.func @transform_3(%arg0: i32) -> (i32, i32) {
    %c0_i32 = arith.constant 0 : i32
    %c0_i32_0 = arith.constant 0 : i32
    return %arg0, %c0_i32 : i32, i32
  }
  func.func @transform_4(%arg0: i32) -> (i32, i32) {
    %c0_i32 = arith.constant 0 : i32
    %c0_i32_0 = arith.constant 0 : i32
    return %arg0, %c0_i32 : i32, i32
  }
  func.func @transform_5(%arg0: i32) -> (i32, i32) {
    %c0_i32 = arith.constant 0 : i32
    %c0_i32_0 = arith.constant 0 : i32
    return %arg0, %c0_i32 : i32, i32
  }
  func.func @transform_6(%arg0: i32) -> (i32, i32) {
    %c0_i32 = arith.constant 0 : i32
    %c0_i32_0 = arith.constant 0 : i32
    %c0_i32_1 = arith.constant 0 : i32
    return %c0_i32, %c0_i32_0 : i32, i32
  }
}

</mosaic_0001>

<bundles_post_ra>
// kernel: tpu_custom_call.1
= control target key start
LH: loop header
LB: loop body
LE: loop exit
PB: predicated region body
PF: predicated region fallthrough
CT: control target
= control target key end

     0   :  { %s1578_s0 = inlined_call_operand.vmem [shape: f32[5,4], index: 0, kind: input, shape index: {}]   ;;  %s1579_s1 = inlined_call_operand.hbm [shape: f32[64,128], index: 1, kind: input, shape index: {}]   ;;  %s1580_s2 = inlined_call_operand.hbm [shape: f32[64,128], index: 2, kind: input, shape index: {}]   ;;  %s1581_s3 = inlined_call_operand.hbm [shape: f32[64,128], index: 3, kind: input, shape index: {}]   ;;  %s1582_s4 = inlined_call_operand.hbm [shape: f32[64,128], index: 4, kind: input, shape index: {}]   ;;  %s1583_s5 = inlined_call_operand.hbm [shape: s32[64,128], index: 5, kind: input, shape index: {}]   ;;  %s1584_s6 = inlined_call_operand.hbm [shape: f32[1,1], index: 6, kind: output, shape index: {}]  }
   0x1   :  { %1593 = sst [smem:[#allocation21_spill]] %s1578_s0 }
   0x2   :  { %1594 = sst [smem:[#allocation22_spill]] %s1579_s1 }
   0x3   :  { %1595 = sst [smem:[#allocation23_spill]] %s1580_s2 }
   0x4   :  { %1596 = sst [smem:[#allocation24_spill]] %s1582_s4 }
   0x5   :  { %11 = vsyncpa [#allocation6], 0 }
   0x6   :  { %12 = vsyncpa [#allocation4], 0 }
   0x7   :  { %14 = vsyncpa [#allocation4 + $0x1], 0 }
   0x8   :  { %15 = vsyncpa [#allocation9], 0 }
   0x9   :  { %17 = vsyncpa [#allocation9 + $0x1], 0 }
   0xa   :  { %18 = vsyncpa [#allocation12], 0 }
   0xb   :  { %20 = vsyncpa [#allocation12 + $0x1], 0 }
   0xc   :  { %21 = vsyncpa [#allocation5], 0  ;;  %s1157_s21 = smov 0   ;;  %s1159_s22 = smov 0  }
   0xd   :  { %s1161_s23 = smov 0   ;;  %s1163_s24 = smov 0  }
   0xe LB: > { %s1178_s25 = sadd.s32 1, %s1110_s24   ;;  %s55_s26 = sadd.s32 1, %s1106_s23  ;;  %s1110_s24 = sphi %s1163_s24, %s1619_s24   ;;  %s1106_s23 = sphi %s1161_s23, %s1618_s23   ;;  %s1102_s22 = sphi %s1159_s22, %s1617_s22   ;;  %s1098_s21 = sphi %s1157_s21, %s1616_s21  }
   0xf   : > { %s52_s27 = ssub.s32 %s1110_s24, %s1178_s25  ;;  %p62_p0 = scmp.ne.s32.totalorder %s1106_s23, %s1102_s22 }
  0x10   : > { %p53_p1 = scmp.eq.s32.totalorder %s52_s27, 0  ;;  %p63_p2 = scmp.eq.s32.totalorder %s1110_s24, 0 }
  0x11   : > { %p835_p3 = scmp.lt.s32.totalorder %s1110_s24, 4  ;;  %s1585_s29 = sand.u32 1, %s1106_s23  }
  0x12   : > { %s1188_s28 = scalar_select %p53_p1, %s1106_s23, %s55_s26  }
  0x13   : > { %p64_p4 = por %p63_p2, %p62_p0  ;;  %s1193_s30 = sshll.u32 %s1585_s29, 4 }
  0x14   : > { %1597 = sst [smem:[#allocation20_spill]] %s1188_s28  ;;  %s1196_s7 = sshll.u32 %s1110_s24, 8 }
  0x15   : > { %p1198_p5 = pnand %p835_p3, %p64_p4  ;;  %s249_s9 = sand.u32 1, %s1110_s24  }
  0x16   : > { %s1599_s2 = sld [smem:[#allocation23_spill]]  ;;  %s253_s13 = scalar_lea.vmem [#allocation8], %s1193_s30 }
  0x17   : > { %s260_s14 = sshll.u32 %s253_s13, 4  ;;  %s1214_s15 = scalar_lea.sflag [#allocation9], %s249_s9  ;;  %s1210_s14 = int_to_ptr.vmem [resolvable:$true] %s260_s14 }
  0x18   : > { %p1220_p7 = pneg %p1198_p5 }
  0x1c   : > { %s1207_s12 = scalar_lea.hbm %s1599_s2, %s1196_s7  ;;  %s888_s20 = scalar_lea.hbm %s1599_s2, 1024 }
  0x1d   : > { %s883_s16 = scalar_lea.hbm %s1207_s12, 256  ;;  %p889_p10 = scmp.lt.u32.totalorder %s1207_s12, %s1599_s2 }
  0x1e   : > { %p884_p6 = scmp.ne.s32.totalorder %s1207_s12, %s883_s16  ;;  %p890_p11 = scmp.lt.u32.totalorder %s888_s20, %s883_s16 }
  0x1f   : > { %p892_p13 = scmp.lt.u32.totalorder %s883_s16, %s1207_s12 }
  0x20   : > { %p886_p8 = pnand %p1220_p7, %p884_p6  ;;  %p891_p12 = por %p890_p11, %p889_p10 }
  0x22   : > { %p887_p9 = pneg %p886_p8  ;;  %p893_p0 = por %p892_p13, %p891_p12 }
  0x24   : > { %p894_p1 = pnand %p893_p0, %p887_p9 }
  0x26   : > { %897 = shalt.err (!%p894_p1)
}
  0x27   : > { %s898_s10 = scalar_lea.vmem %s1210_s14, 256  ;;  %s1112_s11 = smov [#allocation8]  }
  0x28   : > { %p899_p2 = scmp.ne.s32.totalorder %s1210_s14, %s898_s10  ;;  %s903_s13 = sshll.u32 %s1112_s11, 4  ;;  %s904_s13 = int_to_ptr.vmem [resolvable:$false] %s903_s13 }
  0x29   : > { %s905_s18 = scalar_lea.vmem %s904_s13, 512  ;;  %p906_p6 = scmp.lt.s32.totalorder %s1210_s14, %s904_s13 }
  0x2a   : > { %p901_p3 = pnand %p899_p2, %p1220_p7  ;;  %p907_p8 = scmp.lt.s32.totalorder %s905_s18, %s898_s10 }
  0x2c   : > { %p902_p4 = pneg %p901_p3  ;;  %p908_p10 = por %p907_p8, %p906_p6 }
  0x2e   : > { %p909_p11 = pnand %p908_p10, %p902_p4 }
  0x30   : > { %912 = shalt.err (!%p909_p11)
}
  0x31   : > { %s1586_s16 = smov 128   ;;  %s1588_s19 = smov 8  }
  0x32   : > { %824 = dma.hbm_to_vmem [thread:$0]  (!%p1198_p5), %s1207_s12, 256, %s1210_s14, %s1214_s15, %s1586_s16, %s1586_s16, %s1588_s19  }
  0x33   : > { %s1601_s4 = sld [smem:[#allocation24_spill]]  ;;  %s295_s10 = scalar_lea.vmem [#allocation11], %s1193_s30 }
  0x34   : > { %s302_s11 = sshll.u32 %s295_s10, 4  ;;  %s1258_s13 = scalar_lea.sflag [#allocation12], %s249_s9  ;;  %s1254_s11 = int_to_ptr.vmem [resolvable:$true] %s302_s11 }
  0x39   : > { %s1251_s27 = scalar_lea.hbm %s1601_s4, %s1196_s7  ;;  %s918_s20 = scalar_lea.hbm %s1601_s4, 1024 }
  0x3a   : > { %s913_s18 = scalar_lea.hbm %s1251_s27, 256  ;;  %p919_p0 = scmp.lt.u32.totalorder %s1251_s27, %s1601_s4 }
  0x3b   : > { %p914_p9 = scmp.ne.s32.totalorder %s1251_s27, %s913_s18  ;;  %p920_p1 = scmp.lt.u32.totalorder %s918_s20, %s913_s18 }
  0x3c   : > { %p922_p3 = scmp.lt.u32.totalorder %s913_s18, %s1251_s27 }
  0x3d   : > { %p916_p12 = pnand %p914_p9, %p1220_p7  ;;  %p921_p2 = por %p920_p1, %p919_p0 }
  0x3f   : > { %p917_p13 = pneg %p916_p12  ;;  %p923_p4 = por %p922_p3, %p921_p2 }
  0x41   : > { %p924_p6 = pnand %p923_p4, %p917_p13 }
  0x43   : > { %927 = shalt.err (!%p924_p6)
}
  0x44   : > { %s928_s9 = scalar_lea.vmem %s1254_s11, 256  ;;  %s1115_s10 = smov [#allocation11]  }
  0x45   : > { %p929_p8 = scmp.ne.s32.totalorder %s1254_s11, %s928_s9  ;;  %s933_s12 = sshll.u32 %s1115_s10, 4  ;;  %s934_s12 = int_to_ptr.vmem [resolvable:$false] %s933_s12 }
  0x46   : > { %s935_s29 = scalar_lea.vmem %s934_s12, 512  ;;  %p936_p9 = scmp.lt.s32.totalorder %s1254_s11, %s934_s12 }
  0x47   : > { %p931_p10 = pnand %p929_p8, %p1220_p7  ;;  %p937_p12 = scmp.lt.s32.totalorder %s935_s29, %s928_s9 }
  0x49   : > { %p932_p11 = pneg %p931_p10  ;;  %p938_p0 = por %p937_p12, %p936_p9 }
  0x4b   : > { %p939_p1 = pnand %p938_p0, %p932_p11 }
  0x4d   : > { %942 = shalt.err (!%p939_p1)
}
  0x4e   : > { %830 = dma.hbm_to_vmem [thread:$0]  (!%p1198_p5), %s1251_s27, 256, %s1254_s11, %s1258_s13, %s1586_s16, %s1586_s16, %s1588_s19  }
  0x4f   : > { %s1286_s18 = sadd.s32 4294967295, %s1110_s24   ;;  %p68_p13 = scmp.ne.s32.totalorder %s1102_s22, %s1098_s21 }
  0x50   : > { %p1590_p2 = scmp.eq.s32.totalorder %s1286_s18, 0  ;;  %p735_p3 = scmp.ge.s32.totalorder %s1110_s24, 1 }
  0x51   : > { %p204_p4 = scmp.lt.s32.totalorder %s1110_s24, 5  ;;  %s1604_s0 = sld [smem:[#allocation21_spill]] }
  0x52   : > { %p1295_p6 = por %p1590_p2, %p68_p13  ;;  %s1605_s1 = sld [smem:[#allocation22_spill]] }
  0x53   : > { %p1299_p8 = pnand %p735_p3, %p204_p4  ;;  %s232_s12 = scalar_lea.vmem [#allocation7], %s1193_s30 }
  0x54   : > { %s1602_s14 = scalar_select %p1295_p6, 1, 0 }
  0x55   : > { %s1603_s20 = scalar_select %p1299_p8, 1, 0 }
  0x56   : > { %p814_p10 = pneg %p1299_p8  ;;  %s239_s29 = sshll.u32 %s232_s12, 4  ;;  %s1321_s29 = int_to_ptr.vmem [resolvable:$true] %s239_s29 }
  0x57   : > { %s217_s26 = sshll.u32 %s1604_s0, 4  ;;  %s1327_s16 = scalar_lea.hbm %s1581_s3, %s1196_s7  ;;  %s218_s26 = int_to_ptr.vmem [resolvable:$true] %s217_s26 }
  0x58   : > { %s1312_s24 = scalar_lea.hbm %s1605_s1, %s1196_s7  ;;  %p1316_p11 = pnand %p814_p10, %p1590_p2 }
  0x59   : > { %s943_s19 = scalar_lea.vmem %s218_s26, 128  ;;  %p951_p13 = scmp.lt.s32.totalorder %s218_s26, %s218_s26 }
  0x5a   : > { %p944_p9 = scmp.ne.s32.totalorder %s218_s26, %s943_s19  ;;  %p945_p12 = pneg %p1316_p11 }
  0x5b   : > { %p952_p3 = scmp.lt.s32.totalorder %s943_s19, %s943_s19 }
  0x5c   : > { %p946_p0 = pnand %p945_p12, %p944_p9 }
  0x5d   : > { %p953_p4 = por %p952_p3, %p951_p13 }
  0x5e   : > { %p947_p1 = pneg %p946_p0 }
  0x60   : > { %p954_p10 = pnand %p953_p4, %p947_p1 }
  0x62   : > { %957 = shalt.err (!%p954_p10)
}
  0x63   : > { %s1116_s21 = smov [#allocation3]   ;;  %s1607_s9 = sand.u32 1, %s1106_s23  }
  0x64   : > { %817 = dma.vmem_to_smem (!%p1316_p11), %s218_s26, 128, %s1116_s21, [#allocation6]  }
  0x65   : > { %s1335_s12 = scalar_lea.sflag [#allocation4], %s1607_s9  ;;  %s958_s27 = scalar_lea.hbm %s1312_s24, 256 }
  0x66   : > { %p959_p9 = scmp.ne.s32.totalorder %s1312_s24, %s958_s27  ;;  %s963_s0 = scalar_lea.hbm %s1605_s1, 1024 }
  0x67   : > { %p964_p1 = scmp.lt.u32.totalorder %s1312_s24, %s1605_s1  ;;  %p965_p13 = scmp.lt.u32.totalorder %s963_s0, %s958_s27 }
  0x68   : > { %p961_p12 = pnand %p959_p9, %p1220_p7  ;;  %p967_p4 = scmp.lt.u32.totalorder %s958_s27, %s1312_s24 }
  0x69   : > { %p966_p3 = por %p965_p13, %p964_p1 }
  0x6a   : > { %p962_p0 = pneg %p961_p12 }
  0x6b   : > { %p968_p11 = por %p967_p4, %p966_p3 }
  0x6d   : > { %p969_p10 = pnand %p968_p11, %p962_p0 }
  0x6f   : > { %972 = shalt.err (!%p969_p10)
}
  0x70   : > { %s973_s26 = scalar_lea.vmem %s1321_s29, 256  ;;  %s1117_s21 = smov [#allocation7]  }
  0x71   : > { %p974_p9 = scmp.ne.s32.totalorder %s1321_s29, %s973_s26  ;;  %s978_s9 = sshll.u32 %s1117_s21, 4  ;;  %s979_s9 = int_to_ptr.vmem [resolvable:$false] %s978_s9 }
  0x72   : > { %s980_s2 = scalar_lea.vmem %s979_s9, 512  ;;  %p981_p6 = scmp.lt.s32.totalorder %s1321_s29, %s979_s9 }
  0x73   : > { %p976_p12 = pnand %p974_p9, %p1220_p7  ;;  %p982_p8 = scmp.lt.s32.totalorder %s980_s2, %s973_s26 }
  0x75   : > { %p977_p2 = pneg %p976_p12  ;;  %p983_p1 = por %p982_p8, %p981_p6 }
  0x77   : > { %p984_p13 = pnand %p983_p1, %p977_p2 }
  0x79   : > { %987 = shalt.err (!%p984_p13)
}
  0x7a   : > { %s1608_s0 = smov 8   ;;  %s1609_s27 = smov 128  }
  0x7b   : > { %821 = dma.hbm_to_vmem [thread:$0]  (!%p1198_p5), %s1312_s24, 256, %s1321_s29, %s1335_s12, %s1609_s27, %s1609_s27, %s1608_s0  }
  0x7c   : > { %s274_s19 = scalar_lea.vmem [#allocation10], %s1193_s30  ;;  %s1369_s21 = scalar_lea.hbm %s1583_s5, %s1196_s7 }
  0x7d   : > { %s281_s11 = sshll.u32 %s274_s19, 4  ;;  %s988_s9 = scalar_lea.hbm %s1327_s16, 256  ;;  %s1363_s11 = int_to_ptr.vmem [resolvable:$true] %s281_s11 }
  0x7e   : > { %p989_p2 = scmp.ne.s32.totalorder %s1327_s16, %s988_s9  ;;  %s993_s4 = scalar_lea.hbm %s1581_s3, 1024 }
  0x7f   : > { %p994_p0 = scmp.lt.u32.totalorder %s1327_s16, %s1581_s3  ;;  %p995_p3 = scmp.lt.u32.totalorder %s993_s4, %s988_s9 }
  0x80   : > { %p991_p6 = pnand %p989_p2, %p1220_p7  ;;  %p997_p11 = scmp.lt.u32.totalorder %s988_s9, %s1327_s16 }
  0x81   : > { %p996_p4 = por %p995_p3, %p994_p0 }
  0x82   : > { %p992_p8 = pneg %p991_p6 }
  0x83   : > { %p998_p10 = por %p997_p11, %p996_p4 }
  0x85   : > { %p999_p9 = pnand %p998_p10, %p992_p8 }
  0x87   : > { %1002 = shalt.err (!%p999_p9)
}
  0x88   : > { %s1003_s7 = scalar_lea.vmem %s1363_s11, 256  ;;  %s1118_s1 = smov [#allocation10]  }
  0x89   : > { %p1004_p12 = scmp.ne.s32.totalorder %s1363_s11, %s1003_s7  ;;  %s1008_s29 = sshll.u32 %s1118_s1, 4  ;;  %s1009_s29 = int_to_ptr.vmem [resolvable:$false] %s1008_s29 }
  0x8a   : > { %s1010_s28 = scalar_lea.vmem %s1009_s29, 512  ;;  %p1011_p2 = scmp.lt.s32.totalorder %s1363_s11, %s1009_s29 }
  0x8b   : > { %p1006_p1 = pnand %p1004_p12, %p1220_p7  ;;  %p1012_p6 = scmp.lt.s32.totalorder %s1010_s28, %s1003_s7 }
  0x8d   : > { %p1007_p13 = pneg %p1006_p1  ;;  %p1013_p0 = por %p1012_p6, %p1011_p2 }
  0x8f   : > { %p1014_p3 = pnand %p1013_p0, %p1007_p13 }
  0x91   : > { %1017 = shalt.err (!%p1014_p3)
}
  0x92   : > { %827 = dma.hbm_to_vmem [thread:$0]  (!%p1198_p5), %s1327_s16, 256, %s1363_s11, %s1214_s15, %s1609_s27, %s1609_s27, %s1608_s0  }
  0x93   : > { %s316_s4 = scalar_lea.vmem [#allocation13], %s1193_s30  ;;  %s1018_s19 = scalar_lea.hbm %s1369_s21, 256 }
  0x94   : > { %s323_s12 = sshll.u32 %s316_s4, 4  ;;  %p1019_p8 = scmp.ne.s32.totalorder %s1369_s21, %s1018_s19  ;;  %s1397_s12 = int_to_ptr.vmem [resolvable:$true] %s323_s12 }
  0x95   : > { %s1023_s9 = scalar_lea.hbm %s1583_s5, 1024  ;;  %p1024_p10 = scmp.lt.u32.totalorder %s1369_s21, %s1583_s5 }
  0x96   : > { %p1021_p4 = pnand %p1019_p8, %p1220_p7  ;;  %p1025_p9 = scmp.lt.u32.totalorder %s1023_s9, %s1018_s19 }
  0x97   : > { %p1027_p1 = scmp.lt.u32.totalorder %s1018_s19, %s1369_s21 }
  0x98   : > { %p1022_p11 = pneg %p1021_p4  ;;  %p1026_p12 = por %p1025_p9, %p1024_p10 }
  0x9a   : > { %p1028_p13 = por %p1027_p1, %p1026_p12 }
  0x9c   : > { %p1029_p2 = pnand %p1028_p13, %p1022_p11 }
  0x9e   : > { %1032 = shalt.err (!%p1029_p2)
}
  0x9f   : > { %s1033_s30 = scalar_lea.vmem %s1397_s12, 256  ;;  %s1119_s15 = smov [#allocation13]  }
  0xa0   : > { %p1034_p6 = scmp.ne.s32.totalorder %s1397_s12, %s1033_s30  ;;  %s1038_s16 = sshll.u32 %s1119_s15, 4  ;;  %s1039_s16 = int_to_ptr.vmem [resolvable:$false] %s1038_s16 }
  0xa1   : > { %s1040_s11 = scalar_lea.vmem %s1039_s16, 512  ;;  %p1041_p8 = scmp.lt.s32.totalorder %s1397_s12, %s1039_s16 }
  0xa2   : > { %p1036_p0 = pnand %p1034_p6, %p1220_p7  ;;  %p1042_p4 = scmp.lt.s32.totalorder %s1040_s11, %s1033_s30 }
  0xa4   : > { %p1037_p3 = pneg %p1036_p0  ;;  %p1043_p10 = por %p1042_p4, %p1041_p8 }
  0xa6   : > { %p1044_p9 = pnand %p1043_p10, %p1037_p3 }
  0xa8   : > { %1047 = shalt.err (!%p1044_p9)
}
  0xa9   : > { %833 = dma.hbm_to_vmem [thread:$0]  (!%p1198_p5), %s1369_s21, 256, %s1397_s12, %s1258_s13, %s1609_s27, %s1609_s27, %s1608_s0  }
  0xaa   : > { %p1610_p7 = scmp.ne.s32.totalorder %s1603_s20, 0 }
  0xab   : > { %p1611_p11 = scmp.eq.s32.totalorder (!%p1610_p7), %s1286_s18, 0 }
  0xac   : > { %335 = sbr.rel (%p1610_p7) target bundleno = 535 (0x217), region = 44 }
  0xb3   : > { %1077 = dma.done.wait (%p1611_p11), [#allocation6], 128   ;;  %p1612_p12 = pmov %p1611_p11 }
  0xb4   : > { %s341_s17 = sand.u32 1, %s1102_s22   ;;  %p1613_p1 = scmp.ne.s32.totalorder %s1602_s14, 0 }
  0xb5   : > { %1079 = vsyncadd (%p1612_p12), [#allocation6], 4294967168  ;;  %s1431_s8 = sshll.u32 %s341_s17, 4  ;;  %s342_s7 = scalar_lea.sflag [#allocation4], %s341_s17 }
  0xb6   : > { %s345_s1 = scalar_lea.vmem [#allocation7], %s1431_s8 }
  0xb7   : > { %1081 = dma.done.wait (%p1613_p1), %s342_s7, 256  }
  0xb8   : > { %1083 = vsyncadd (%p1613_p1), %s342_s7, 4294967040  ;;  %s350_s13 = sand.u32 1, %s1286_s18   ;;  %s354_s0 = scalar_lea.vmem [#allocation8], %s1431_s8 }
  0xb9   : > { %s351_s20 = scalar_lea.sflag [#allocation9], %s350_s13 }
  0xba   : > { %1085 = dma.done.wait (%p1613_p1), %s351_s20, 512  }
  0xbb   : > { %1087 = vsyncadd (%p1613_p1), %s351_s20, 4294966784  ;;  %s363_s27 = scalar_lea.vmem [#allocation10], %s1431_s8  ;;  %s369_s21 = scalar_lea.sflag [#allocation12], %s350_s13 }
  0xbc   : > { %s372_s29 = scalar_lea.vmem [#allocation11], %s1431_s8 }
  0xbd   : > { %1089 = dma.done.wait (%p1613_p1), %s369_s21, 512  }
  0xbe   : > { %1091 = vsyncadd (%p1613_p1), %s369_s21, 4294966784  ;;  %s381_s28 = scalar_lea.vmem [#allocation13], %s1431_s8 }
  0xbf   : > { %386 = sfence }
  0xc0   : > { %s762_s4 = sld [smem:[#allocation3 + $0x100]]  ;;  %s767_s10 = sld [smem:[#allocation3 + $0x101]]  ;;  %v1451_v0 = vld [vmem:[%s381_s28] sm:$0xff]  ;;  %v1453_v1 = vld [vmem:[%s381_s28 + $0x8] sm:$0xff] }
  0xc1   : > { %s763_s12 = sld [smem:[#allocation3 + $0x180]]  ;;  %s768_s26 = sld [smem:[#allocation3 + $0x181]]  ;;  %vm451_vm0 = vcmp.eq.s32.totalorder %v1451_v0, 1  ;;  %vm452_vm1 = vcmp.eq.s32.totalorder %v1453_v1, 1  ;;  %vm473_vm2 = vcmp.eq.s32.totalorder %v1451_v0, 2  ;;  %vm474_vm3 = vcmp.eq.s32.totalorder %v1453_v1, 2 }
  0xc2   : > { %s764_s19 = sld [smem:[#allocation3 + $0x200]]  ;;  %s769_s9 = sld [smem:[#allocation3 + $0x201]]  ;;  %vm495_vm4 = vcmp.eq.s32.totalorder %v1451_v0, 3  ;;  %vm496_vm5 = vcmp.eq.s32.totalorder %v1453_v1, 3  ;;  %v517_v21 = vld [vmem:[%s354_s0] sm:$0xff]  ;;  %v518_v24 = vld [vmem:[%s354_s0 + $0x8] sm:$0xff] }
  0xc3   : > { %s772_s2 = sld [smem:[#allocation3 + $0x102]]  ;;  %s1457_s15 = sld [smem:[#allocation3 + $0x103]]  ;;  %v521_v25 = vld [vmem:[%s363_s27] sm:$0xff]  ;;  %v522_v28 = vld [vmem:[%s363_s27 + $0x8] sm:$0xff] }
  0xc4   : > { %s773_s24 = sld [smem:[#allocation3 + $0x182]]  ;;  %s1459_s14 = sld [smem:[#allocation3 + $0x183]]  ;;  %v527_v33 = vld [vmem:[%s372_s29] sm:$0xff]  ;;  %v528_v34 = vld [vmem:[%s372_s29 + $0x8] sm:$0xff] }
  0xc5   : > { %s1455_s30 = sld [smem:[#allocation3 + $0x202]]  ;;  %s1465_s16 = sld [smem:[#allocation3 + $0x203]] }
  0xc6   : > { %v446_v2 = vstv %s762_s4  ;;  %v462_v4 = vstv %s767_s10  ;;  %s761_s11 = sld [smem:[#allocation3 + $0x80]]  ;;  %s766_s17 = sld [smem:[#allocation3 + $0x81]] }
  0xc7   : > { %v448_v3 = vstv %s763_s12  ;;  %v466_v5 = vstv %s768_s26  ;;  %v463_v8 = vsel %vm451_vm0, %v462_v4, %v446_v2  ;;  %v464_v9 = vsel %vm452_vm1, %v462_v4, %v446_v2  ;;  %s441_s7 = sld [smem:[#allocation3]]  ;;  %s765_s13 = sld [smem:[#allocation3 + $0x1]] }
  0xc8   : > { %v450_v6 = vstv %s764_s19  ;;  %v470_v7 = vstv %s769_s9  ;;  %v467_v10 = vsel %vm451_vm0, %v466_v5, %v448_v3  ;;  %v468_v11 = vsel %vm452_vm1, %v466_v5, %v448_v3  ;;  %s771_s20 = sld [smem:[#allocation3 + $0x82]]  ;;  %s776_s27 = sld [smem:[#allocation3 + $0x83]] }
  0xc9   : > { %v484_v12 = vstv %s772_s2  ;;  %v471_v14 = vsel %vm451_vm0, %v470_v7, %v450_v6  ;;  %v472_v15 = vsel %vm452_vm1, %v470_v7, %v450_v6  ;;  %v506_v22 = vstv %s1457_s15  ;;  %s770_s0 = sld [smem:[#allocation3 + $0x2]]  ;;  %s775_s21 = sld [smem:[#allocation3 + $0x3]] }
  0xca   : > { %v488_v13 = vstv %s773_s24  ;;  %v485_v17 = vsel %vm473_vm2, %v484_v12, %v463_v8  ;;  %v486_v18 = vsel %vm474_vm3, %v484_v12, %v464_v9  ;;  %v510_v23 = vstv %s1459_s14  ;;  %s1120_s29 = smov 0.0   ;;  %p1614_p5 = pmov %p1611_p11 }
  0xcb   : > { %v492_v16 = vstv %s1455_s30  ;;  %v489_v19 = vsel %vm473_vm2, %v488_v13, %v467_v10  ;;  %v490_v20 = vsel %vm474_vm3, %v488_v13, %v468_v11  ;;  %v507_v29 = vsel %vm495_vm4, %v506_v22, %v485_v17  ;;  %v439_v13 = vld [vmem:[%s345_s1] sm:$0xff]  ;;  %p780_p13 = scmp.ne.s32.totalorder %s1286_s18, 3 }
  0xcc   : > { %v493_v26 = vsel %vm473_vm2, %v492_v16, %v471_v14  ;;  %v494_v27 = vsel %vm474_vm3, %v492_v16, %v472_v15  ;;  %v508_v30 = vsel %vm496_vm5, %v506_v22, %v486_v18  ;;  %v511_v31 = vsel %vm495_vm4, %v510_v23, %v489_v19  ;;  %v440_v15 = vld [vmem:[%s345_s1 + $0x8] sm:$0xff]  ;;  %809 = sst [smem:[#allocation2]] (%p1614_p5), %s1120_s29 }
  0xcd   : > { %v512_v32 = vsel %vm496_vm5, %v510_v23, %v490_v20  ;;  %v514_v35 = vstv %s1465_s16  ;;  %v519_v36 = vmul.f32 %v517_v21, %v507_v29  ;;  %v520_v37 = vmul.f32 %v518_v24, %v508_v30  ;;  %s545_s8 = sld [smem:[#allocation2]] }
  0xce   : > { %v523_v38 = vmul.f32 %v521_v25, %v511_v31  ;;  %v515_v39 = vsel %vm495_vm4, %v514_v35, %v493_v26  ;;  %v516_v40 = vsel %vm496_vm5, %v514_v35, %v494_v27  ;;  %v524_v41 = vmul.f32 %v522_v28, %v512_v32 }
  0xcf   : > { %v529_v43 = vmul.f32 %v527_v33, %v515_v39  ;;  %v530_v44 = vmul.f32 %v528_v34, %v516_v40  ;;  %v444_v51 = vstv %s761_s11  ;;  %v458_v52 = vstv %s766_s17 }
  0xd0   : > { %v525_v42 = vadd.f32 %v523_v38, %v519_v36  ;;  %v526_v45 = vadd.f32 %v524_v41, %v520_v37  ;;  %v442_v54 = vstv %s441_s7  ;;  %v454_v55 = vstv %s765_s13 }
  0xd1   : > { %v459_v56 = vsel %vm451_vm0, %v458_v52, %v444_v51  ;;  %v480_v57 = vstv %s771_s20  ;;  %v460_v58 = vsel %vm452_vm1, %v458_v52, %v444_v51  ;;  %v455_v59 = vsel %vm451_vm0, %v454_v55, %v442_v54 }
  0xd2   : > { %v531_v46 = vadd.f32 %v529_v43, %v525_v42  ;;  %v532_v47 = vadd.f32 %v530_v44, %v526_v45  ;;  %v476_v60 = vstv %s770_s0  ;;  %v456_v61 = vsel %vm452_vm1, %v454_v55, %v442_v54 }
  0xd3   : > { %v481_v62 = vsel %vm473_vm2, %v480_v57, %v459_v56  ;;  %v502_v63 = vstv %s776_s27  ;;  %v482_v2 = vsel %vm474_vm3, %v480_v57, %v460_v58  ;;  %v477_v3 = vsel %vm473_vm2, %v476_v60, %v455_v59 }
  0xd4   : > { %v533_v48 = vsub.f32 0.0, %v531_v46  ;;  %v534_v49 = vsub.f32 0.0, %v532_v47  ;;  %v498_v4 = vstv %s775_s21  ;;  %v478_v5 = vsel %vm474_vm3, %v476_v60, %v456_v61 }
  0xd5   : > { %v503_v6 = vsel %vm495_vm4, %v502_v63, %v481_v62  ;;  %v504_v7 = vsel %vm496_vm5, %v502_v63, %v482_v2  ;;  %v499_v9 = vsel %vm495_vm4, %v498_v4, %v477_v3  ;;  %v500_v11 = vsel %vm496_vm5, %v498_v4, %v478_v5 }
  0xd6   : > { %v535_v50 = vmul.f32 1.442695, %v533_v48  ;;  %v537_v53 = vmul.f32 1.442695, %v534_v49 }
  0xd8   : > { %877 = vpow2.f32 %v535_v50 }
  0xd9   : > { %879 = vpow2.f32 %v537_v53 }
  0xe2   : > { %v878_v8 = vpop.eup %877 }
  0xe3   : > { %v880_v10 = vpop.eup %879  ;;  %v539_v12 = vmul.f32 %v878_v8, %v503_v6 }
  0xe4   : > { %v540_v14 = vmul.f32 %v880_v10, %v504_v7 }
  0xe5   : > { %v541_v16 = vsub.f32 %v499_v9, %v539_v12 }
  0xe6   : > { %v542_v17 = vsub.f32 %v500_v11, %v540_v14 }
  0xe7   : > { %v543_v18 = vsub.f32 %v439_v13, %v541_v16 }
  0xe8   : > { %v544_v19 = vsub.f32 %v440_v15, %v542_v17 }
  0xe9   : > { %v546_v20 = vmul.f32 %v543_v18, %v543_v18 }
  0xea   : > { %v547_v21 = vmul.f32 %v544_v19, %v544_v19 }
  0xec   : > { %v548_v22 = vadd.f32 %v547_v21, %v546_v20 }
  0xee   : > { %549 = vadd.xlane.f32.xlu0 %v548_v22 }
 0x17b   : > { %v550_v0 = vpop.xlane.xlu0 %549 }
 0x17c   : > { %v551_v1 = vrot.slane %v550_v0, 4 }
 0x17e   : > { %v552_v23 = vadd.f32 %v551_v1, %v550_v0 }
 0x180   : > { %v553_v24 = vrot.slane %v552_v23, 2 }
 0x182   : > { %v554_v25 = vadd.f32 %v553_v24, %v552_v23 }
 0x184   : > { %v555_v26 = vrot.slane %v554_v25, 1 }
 0x186   : > { %v556_v27 = vadd.f32 %v555_v26, %v554_v25 }
 0x188   : > { %790 = vpush %v556_v27 }
 0x1b6   : > { %564 = sbr.rel (%p780_p13) target bundleno = 520 (0x208), region = 76 }
 0x1b9   : > { %s791_s1 = spop %790 }
 0x1ba   : > { %s558_s28 = sadd.f32 %s791_s1, %s545_s8 }
 0x1bc   : > { %560 = sst [smem:[#allocation2]] %s558_s28 }
 0x1bd   : > { %s565_s4 = sld [smem:[#allocation2]] }
 0x1c3   : > { %s568_s12 = smul.f32 0.00012207031, %s565_s4 }
 0x1c5   : > { %v569_v28 = vstv %s568_s12 }
 0x1c6   : > { %881 = vrsqrt.f32 %v569_v28  ;;  %vm572_vm6 = vcmp.eq.f32.partialorder %v569_v28, inf  ;;  %v575_v30 = vand.u32 2147483648, %v569_v28  ;;  %vm574_vm7 = vcmp.eq.f32.partialorder %v569_v28, 0.0 }
 0x1d0   : > { %v882_v29 = vpop.eup %881 }
 0x1d1   : > { %v571_v31 = vmul.f32 %v882_v29, %v569_v28 }
 0x1d3   : > { %v573_v32 = vsel %vm572_vm6, %v569_v28, %v571_v31 }
 0x1d4   : > { %v576_v33 = vsel %vm574_vm7, %v575_v30, %v573_v32 }
 0x1d5   : > { %792 = vpush %v576_v33 }
 0x206   : > { %s793_s19 = spop %792 }
 0x207   : > { %579 = sst [smem:[#allocation14]] %s793_s19 }
 0x208 PF: > { %p838_p2 = scmp.eq.s32.totalorder %s1286_s18, 3  ;;  %s1048_s9 = scalar_lea.hbm %s1584_s6, 16 }
 0x209   : > { %p1049_p6 = scmp.ne.s32.totalorder %s1584_s6, %s1048_s9  ;;  %p1054_p8 = scmp.lt.u32.totalorder %s1048_s9, %s1584_s6 }
 0x20b   : > { %p1050_p0 = pnand %p1049_p6, %p838_p2 }
 0x20d   : > { %p1051_p3 = pneg %p1050_p0 }
 0x20f   : > { %p1056_p4 = pnand %p1054_p8, %p1051_p3 }
 0x211   : > { %1059 = shalt.err (!%p1056_p4)
}
 0x212   : > { %s1121_s14 = smov [#allocation14]  }
 0x213   : > { %811 = dma.smem_to_hbm (%p838_p2), %s1121_s14, 16, %s1584_s6, [#allocation5]  }
 0x214   : > { %1093 = dma.done.wait (%p838_p2), [#allocation5], 16  }
 0x215   : > { %1095 = vsyncadd (%p838_p2), [#allocation5], 4294967280 }
 0x216   : > { %593 = sfence }
 0x217 PF: > { %s1615_s18 = sld [smem:[#allocation20_spill]]  ;;  %p24_p10 = scmp.ge.s32.totalorder %s1178_s25, 6  }
 0x218   : > { %s1616_s21 = smov %s1102_s22  ;;  %s1617_s22 = smov %s1106_s23 }
 0x219   : > { %s1619_s24 = smov %s1178_s25  ;;  %26 = sbr.rel (!%p24_p10) target bundleno = 14 (0xe), region = 145 }
 0x21d   : > { %s1618_s23 = smov %s1615_s18 }
 0x220   :  { %599 = vsyncpa [#allocation4], 1 }
 0x221   :  { %601 = vsyncpa [#allocation4 + $0x1], 1 }
 0x222   :  { %602 = vsyncpa [#allocation9], 1 }
 0x223   :  { %604 = vsyncpa [#allocation9 + $0x1], 1 }
 0x224   :  { %605 = vsyncpa [#allocation12], 1 }
 0x225   :  { %607 = vsyncpa [#allocation12 + $0x1], 1 }
 0x226   :  { %608 = vsyncpa [#allocation5], 1 }
 0x227   :  { %610 = vsyncpa [#allocation5 + $0x1], 1 }
 0x228   :  { %611 = vsyncpa [#allocation6], 1 }
 0x229   :  { %613 = vsyncpa [#allocation6 + $0x1], 1 }

</bundles_post_ra>
